<compile_context>
chip_gen: v6e
topology: v6e:2x2x1
jax: 0.10.0
libtpu: 0.0.40
codegen_flags: <defaults>
</compile_context>

<pallas_src>
import functools

import jax
import jax.numpy as jnp
from jax import lax
from jax.experimental import pallas as pl
from jax.experimental.pallas import tpu as pltpu

_TB_MAX = 1024  # batch-tile cap; chosen for per-step overhead, not VMEM


def _round_up(x: int, m: int) -> int:
    return (x + m - 1) // m * m


def _batch_tiling(batch: int):
    """Pick (tile_rows, padded_batch).  >=2 grid steps when batch allows so the
    'parallel' axis can use both v7x TensorCores; harmless (sequential loop)
    on v5e/v6e."""
    bp8 = _round_up(max(batch, 1), 8)
    if bp8 < 32:
        return bp8, bp8                       # single step, full-extent block
    tb = min(_TB_MAX, _round_up((bp8 + 1) // 2, 16))  # 16-row granularity: bf16-safe blocks
    bp = _round_up(bp8, tb)
    return tb, bp


def _pin(shape):
    # Weight/bias block: full extent, same block for every batch-grid step
    # (DMA'd once, resident in VMEM across the grid).
    return pl.BlockSpec(shape, lambda i: (0,) * len(shape))


def _compiler_params():
    return pltpu.CompilerParams(dimension_semantics=("parallel",))


# ---------------------------------------------------------------------------
# Kernels
# ---------------------------------------------------------------------------
def _actor_kernel(obs_ref, w1_ref, b1_ref, w2_ref, b2_ref, out_ref):
    obs_bf = obs_ref[...].astype(jnp.bfloat16)                  # bf16 MXU input
    h = jnp.dot(obs_bf, w1_ref[...], preferred_element_type=jnp.float32)
    h = jnp.maximum(h + b1_ref[...], 0.0)                       # f32 VPU epilogue
    a = jnp.dot(h.astype(jnp.bfloat16), w2_ref[...],
                preferred_element_type=jnp.float32)
    # Lane-dense 128-wide slab, bf16 store (halves writeback); pad lanes are 0
    # because a_w2/a_b2 pad columns are zero-initialized.
    out_ref[...] = jnp.tanh(a + b2_ref[...]).astype(out_ref.dtype)


def _critic_kernel(obs_ref, act_ref, w1o_ref, w1a_ref, b1_ref, w2row_ref,
                   b2_ref, out_ref):
    # Split-K: obs and act arrive as separate (unpadded) inputs; no XLA-side
    # pad/concat round-trip through HBM.
    h = jnp.dot(obs_ref[...].astype(jnp.bfloat16), w1o_ref[...],
                preferred_element_type=jnp.float32)
    h = h + jnp.dot(act_ref[...], w1a_ref[...],        # f32 x f32, K=act_dim (tiny)
                    preferred_element_type=jnp.float32)
    h = jnp.maximum(h + b1_ref[...], 0.0)
    # N=1 head: VPU multiply + XLU lane reduce instead of an MXU pass.
    q = jnp.sum(h * w2row_ref[...], axis=-1, keepdims=True) + b2_ref[...]
    # Broadcast across 128 lanes -> unmasked vst; bf16 store; wrapper slices.
    out_ref[...] = jnp.broadcast_to(q, out_ref.shape).astype(out_ref.dtype)


def _fused_pq_kernel(act_dim, obs_ref, aw1_ref, ab1_ref, aw2_ref, ab2_ref,
                     cw1o_ref, cw1a_ref, cb1_ref, cw2row_ref, cb2_ref,
                     out_ref):
    obs_bf = obs_ref[...].astype(jnp.bfloat16)
    # ---- critic obs-partial first (only obs live) ----
    hq = jnp.dot(obs_bf, cw1o_ref[...], preferred_element_type=jnp.float32)
    # ---- actor (h dies before the critic finishes) ----
    h = jnp.dot(obs_bf, aw1_ref[...], preferred_element_type=jnp.float32)
    h = jnp.maximum(h + ab1_ref[...], 0.0)
    a = jnp.dot(h.astype(jnp.bfloat16), aw2_ref[...],
                preferred_element_type=jnp.float32)
    action = jnp.tanh(a + ab2_ref[...])        # (tb, AP); pad lanes exactly 0
    # ---- critic finish on (obs, action); action never leaves vregs ----
    # (cw1a pad rows are zero, so action pad lanes contribute nothing.)
    hq = hq + jnp.dot(action.astype(jnp.bfloat16), cw1a_ref[...],
                      preferred_element_type=jnp.float32)
    hq = jnp.maximum(hq + cb1_ref[...], 0.0)
    q = jnp.sum(hq * cw2row_ref[...], axis=-1, keepdims=True) + cb2_ref[...]
    # Merge action + q into ONE lane-dense slab: lanes [0,act_dim)=action,
    # lane act_dim = q.  Single bf16 write instead of two f32 slabs.
    lane = lax.broadcasted_iota(jnp.int32, out_ref.shape, dimension=1)
    q_b = jnp.broadcast_to(q, out_ref.shape)
    out_ref[...] = jnp.where(lane == act_dim, q_b, action).astype(out_ref.dtype)


# ---------------------------------------------------------------------------
# pallas_call wrappers (traced inside jit-cached closures)
# ---------------------------------------------------------------------------
def _p_pallas(params, obs, act_dim):
    batch, obs_dim = obs.shape
    tb, bp = _batch_tiling(batch)
    if bp != batch:
        obs = jnp.pad(obs, ((0, bp - batch), (0, 0)))
    AP = params["a_w2"].shape[1]
    out = pl.pallas_call(
        _actor_kernel,
        out_shape=jax.ShapeDtypeStruct((bp, AP), jnp.bfloat16),
        grid_spec=pltpu.PrefetchScalarGridSpec(
            num_scalar_prefetch=0,
            grid=(bp // tb,),
            in_specs=[
                pl.BlockSpec((tb, obs_dim), lambda i: (i, 0)),
                _pin(params["a_w1"].shape), _pin(params["a_b1"].shape),
                _pin(params["a_w2"].shape), _pin(params["a_b2"].shape),
            ],
            out_specs=pl.BlockSpec((tb, AP), lambda i: (i, 0)),
        ),
        compiler_params=_compiler_params(),
    )(obs, params["a_w1"], params["a_b1"], params["a_w2"], params["a_b2"])
    # single slice + upcast (one XLA fusion)
    return out[:batch, :act_dim].astype(jnp.float32)


def _q_pallas(params, obs, act):
    batch, obs_dim = obs.shape
    act_dim = act.shape[1]
    tb, bp = _batch_tiling(batch)
    if bp != batch:
        obs = jnp.pad(obs, ((0, bp - batch), (0, 0)))
        act = jnp.pad(act, ((0, bp - batch), (0, 0)))
    out = pl.pallas_call(
        _critic_kernel,
        out_shape=jax.ShapeDtypeStruct((bp, 128), jnp.bfloat16),
        grid_spec=pltpu.PrefetchScalarGridSpec(
            num_scalar_prefetch=0,
            grid=(bp // tb,),
            in_specs=[
                pl.BlockSpec((tb, obs_dim), lambda i: (i, 0)),
                pl.BlockSpec((tb, act_dim), lambda i: (i, 0)),
                _pin(params["c_w1_obs"].shape), _pin(params["c_w1_act"].shape),
                _pin(params["c_b1"].shape), _pin(params["c_w2_row"].shape),
                _pin(params["c_b2"].shape),
            ],
            out_specs=pl.BlockSpec((tb, 128), lambda i: (i, 0)),
        ),
        compiler_params=_compiler_params(),
    )(obs, act, params["c_w1_obs"], params["c_w1_act"], params["c_b1"],
      params["c_w2_row"], params["c_b2"])
    return out[:batch, :1].astype(jnp.float32)


def _pq_pallas(params, obs, act_dim):
    batch, obs_dim = obs.shape
    tb, bp = _batch_tiling(batch)
    if bp != batch:
        obs = jnp.pad(obs, ((0, bp - batch), (0, 0)))
    AP = params["a_w2"].shape[1]
    out = pl.pallas_call(
        functools.partial(_fused_pq_kernel, act_dim),
        out_shape=jax.ShapeDtypeStruct((bp, AP), jnp.bfloat16),
        grid_spec=pltpu.PrefetchScalarGridSpec(
            num_scalar_prefetch=0,
            grid=(bp // tb,),
            in_specs=[
                pl.BlockSpec((tb, obs_dim), lambda i: (i, 0)),
                _pin(params["a_w1"].shape), _pin(params["a_b1"].shape),
                _pin(params["a_w2"].shape), _pin(params["a_b2"].shape),
                _pin(params["c_w1_obs"].shape), _pin(params["c_w1_act_pad"].shape),
                _pin(params["c_b1"].shape), _pin(params["c_w2_row"].shape),
                _pin(params["c_b2"].shape),
            ],
            out_specs=pl.BlockSpec((tb, AP), lambda i: (i, 0)),
        ),
        compiler_params=_compiler_params(),
    )(obs, params["a_w1"], params["a_b1"], params["a_w2"], params["a_b2"],
      params["c_w1_obs"], params["c_w1_act_pad"], params["c_b1"],
      params["c_w2_row"], params["c_b2"])
    # one slice/upcast of the merged slab, then two cheap views of the result
    sl = out[:batch, :act_dim + 1].astype(jnp.float32)
    return sl[:, :act_dim], sl[:, act_dim:act_dim + 1]


# ---------------------------------------------------------------------------
# Parameters (padded; matmul weights bf16, heads/biases f32)
# ---------------------------------------------------------------------------
def _init_params(obs_dim, act_dim, hidden, key):
    HP = _round_up(hidden, 128)        # hidden padded to full lanes (128 only)
    AP = _round_up(act_dim + 1, 128)   # +1 guarantees a spare lane for q in pq()
    ks = jax.random.split(key, 8)

    def u(rng, shape, fan_in):
        bound = float(fan_in) ** -0.5
        return jax.random.uniform(rng, shape, jnp.float32, -bound, bound)

    def padto(x, shape):
        return jnp.pad(x, [(0, s - d) for d, s in zip(x.shape, shape)])

    # actor: obs_dim -> hidden -> act_dim
    a_w1 = u(ks[0], (obs_dim, hidden), obs_dim)
    a_b1 = u(ks[1], (1, hidden), obs_dim)
    a_w2 = u(ks[2], (hidden, act_dim), hidden)
    a_b2 = u(ks[3], (1, act_dim), hidden)
    # critic: (obs_dim + act_dim) -> hidden -> 1
    fc = obs_dim + act_dim
    c_w1 = u(ks[4], (fc, hidden), fc)
    c_b1 = u(ks[5], (1, hidden), fc)
    c_w2 = u(ks[6], (hidden, 1), hidden)
    c_b2 = u(ks[7], (1, 1), hidden)

    # NOTE: pad columns of a_w2 / a_b2 MUST stay zero: the fused critic relies
    # on the action pad lanes being exactly tanh(0) == 0.
    c_w1_act_vals = c_w1[obs_dim:].astype(jnp.bfloat16).astype(jnp.float32)

    return dict(
        a_w1=padto(a_w1, (obs_dim, HP)).astype(jnp.bfloat16),
        a_b1=padto(a_b1, (1, HP)),
        a_w2=padto(a_w2, (HP, AP)).astype(jnp.bfloat16),
        a_b2=padto(a_b2, (1, AP)),
        # critic W1 split into obs / act parts (no in-kernel sublane slicing)
        c_w1_obs=padto(c_w1[:obs_dim], (obs_dim, HP)).astype(jnp.bfloat16),
        c_w1_act=padto(c_w1_act_vals, (act_dim, HP)),              # f32 container,
        c_w1_act_pad=padto(c_w1_act_vals, (AP, HP)).astype(jnp.bfloat16),  # bf16 values
        c_b1=padto(c_b1, (1, HP)),
        c_w2_row=padto(c_w2.T, (1, HP)),   # f32 row vector for VPU reduce
        c_b2=c_b2,
    )


class ActorCriticPallas:
    """DDPG actor-critic whose hot paths are fused Pallas TPU kernels."""

    def __init__(self, obs_dim: int, act_dim: int, hidden: int, key):
        self.obs_dim, self.act_dim, self.hidden = obs_dim, act_dim, hidden
        self.params = _init_params(obs_dim, act_dim, hidden, key)
        ad = act_dim
        # jit-cached executables: no per-call retrace/re-lower of pallas_call.
        self._p_jit = jax.jit(lambda prm, obs: _p_pallas(prm, obs, ad))
        self._q_jit = jax.jit(_q_pallas)
        self._pq_jit = jax.jit(lambda prm, obs: _pq_pallas(prm, obs, ad))

    def p(self, obs):
        return self._p_jit(self.params, obs)

    def q(self, obs, act):
        return self._q_jit(self.params, obs, act)

    def pq(self, obs):
        """Fused p(obs) and q(obs, p(obs)) in a single pallas_call / HBM slab."""
        return self._pq_jit(self.params, obs)

    def forward(self, inputs):
        # TODO(synk): reference base-class forward raises NotImplementedError;
        # route through the actor (standard DDPG usage).
        return self.p(inputs)


# ---------------------------------------------------------------------------
# Pure-JAX references (mirror the kernel math; kernels additionally round the
# stored outputs to bf16, covered by the test tolerances)
# ---------------------------------------------------------------------------
def _ref_p(params, obs, act_dim):
    h = jnp.dot(obs.astype(jnp.bfloat16), params["a_w1"],
                preferred_element_type=jnp.float32)
    h = jnp.maximum(h + params["a_b1"], 0.0)
    a = jnp.dot(h.astype(jnp.bfloat16), params["a_w2"],
                preferred_element_type=jnp.float32)
    return jnp.tanh(a + params["a_b2"])[:, :act_dim]


def _ref_q(params, obs, act):
    h = jnp.dot(obs.astype(jnp.bfloat16), params["c_w1_obs"],
                preferred_element_type=jnp.float32)
    h = h + jnp.dot(act, params["c_w1_act"], preferred_element_type=jnp.float32)
    h = jnp.maximum(h + params["c_b1"], 0.0)
    return jnp.sum(h * params["c_w2_row"], axis=-1, keepdims=True) + params["c_b2"]


if __name__ == "__main__":
    key = jax.random.PRNGKey(0)
    k_param, k_obs, k_act = jax.random.split(key, 3)

    BATCH, OBS_DIM, ACT_DIM, HIDDEN = 8, 16, 8, 32
    model = ActorCriticPallas(OBS_DIM, ACT_DIM, HIDDEN, k_param)

    obs = jax.random.normal(k_obs, (BATCH, OBS_DIM), jnp.float32)
    act_in = jax.random.normal(k_act, (BATCH, ACT_DIM), jnp.float32)

    action = jax.block_until_ready(model.p(obs))
    q_val = jax.block_until_ready(model.q(obs, act_in))
    a_fused, q_fused = jax.block_until_ready(model.pq(obs))
    fwd = jax.block_until_ready(model.forward(obs))

    # shapes
    assert action.shape == (BATCH, ACT_DIM)
    assert q_val.shape == (BATCH, 1)
    assert a_fused.shape == (BATCH, ACT_DIM) and q_fused.shape == (BATCH, 1)
    assert fwd.shape == (BATCH, ACT_DIM)

    # correctness vs pure-JAX references (tolerance covers bf16 store rounding)
    ref_a = _ref_p(model.params, obs, ACT_DIM)
    ref_q = _ref_q(model.params, obs, act_in)
    assert jnp.allclose(action, ref_a, atol=2e-2, rtol=2e-2)
    assert jnp.allclose(q_val, ref_q, atol=2e-2, rtol=2e-2)

    # fused path consistent with chained Pallas path
    assert jnp.allclose(a_fused, action, atol=2e-2, rtol=2e-2)
    q_chained = model.q(obs, action)
    assert jnp.allclose(q_fused, q_chained, atol=3e-2, rtol=3e-2)

    # larger batch: exercises grid > 1 (megacore 'parallel' sharding on v7x)
    obs_big = jax.random.normal(k_obs, (100, OBS_DIM), jnp.float32)
    a_big, q_big = jax.block_until_ready(model.pq(obs_big))
    assert a_big.shape == (100, ACT_DIM) and q_big.shape == (100, 1)
    ref_a_big = _ref_p(model.params, obs_big, ACT_DIM)
    assert jnp.allclose(a_big, ref_a_big, atol=2e-2, rtol=2e-2)

    print("KERNEL_OK")
</pallas_src>

<mosaic_0001>
module attributes {stable_mosaic.version = 11 : i64} {
  func.func @_actor_kernel(%arg0: i32, %arg1: memref<8x16xf32, #tpu.memory_space<vmem>>, %arg2: memref<16x128xbf16, #tpu.memory_space<vmem>>, %arg3: memref<1x128xf32, #tpu.memory_space<vmem>>, %arg4: memref<128x128xbf16, #tpu.memory_space<vmem>>, %arg5: memref<1x128xf32, #tpu.memory_space<vmem>>, %arg6: memref<8x128xbf16, #tpu.memory_space<vmem>>) attributes {dimension_semantics = [#tpu.dimension_semantics<parallel>], iteration_bounds = array<i64: 1>, scalar_prefetch = 0 : i64, scratch_operands = 0 : i64, tpu.core_type = #tpu.core_type<tc>, window_params = [{transform_indices = @transform_0, window_bounds = array<i64: 8, 16>}, {pipeline_mode = #tpu.pipeline_mode<synchronous>, transform_indices = @transform_1, window_bounds = array<i64: 16, 128>}, {pipeline_mode = #tpu.pipeline_mode<synchronous>, transform_indices = @transform_2, window_bounds = array<i64: 1, 128>}, {pipeline_mode = #tpu.pipeline_mode<synchronous>, transform_indices = @transform_3, window_bounds = array<i64: 128, 128>}, {pipeline_mode = #tpu.pipeline_mode<synchronous>, transform_indices = @transform_4, window_bounds = array<i64: 1, 128>}, {transform_indices = @transform_5, window_bounds = array<i64: 8, 128>}]} {
    %c0 = arith.constant 0 : index
    %c0_0 = arith.constant 0 : index
    %0 = vector.load %arg1[%c0, %c0_0] : memref<8x16xf32, #tpu.memory_space<vmem>>, vector<8x16xf32>
    %1 = arith.truncf %0 : vector<8x16xf32> to vector<8x16xbf16>
    %c0_1 = arith.constant 0 : index
    %c0_2 = arith.constant 0 : index
    %2 = vector.load %arg2[%c0_1, %c0_2] : memref<16x128xbf16, #tpu.memory_space<vmem>>, vector<16x128xbf16>
    %cst = arith.constant dense<0.000000e+00> : vector<8x128xf32>
    %3 = tpu.matmul %1, %2, %cst {dimension_numbers = #tpu.dot_dimension_numbers<[1], [0], [0], [1], [0, 0, 1, 1], [], []>} : vector<8x16xbf16>, vector<16x128xbf16>, vector<8x128xf32> -> vector<8x128xf32>
    %c0_3 = arith.constant 0 : index
    %c0_4 = arith.constant 0 : index
    %4 = vector.load %arg3[%c0_3, %c0_4] : memref<1x128xf32, #tpu.memory_space<vmem>>, vector<1x128xf32>
    %5 = vector.broadcast %4 : vector<1x128xf32> to vector<8x128xf32>
    %6 = arith.addf %3, %5 : vector<8x128xf32>
    %cst_5 = arith.constant 0.000000e+00 : f32
    %7 = vector.broadcast %cst_5 : f32 to vector<8x128xf32>
    %8 = arith.maximumf %6, %7 : vector<8x128xf32>
    %9 = arith.truncf %8 : vector<8x128xf32> to vector<8x128xbf16>
    %c0_6 = arith.constant 0 : index
    %c0_7 = arith.constant 0 : index
    %10 = vector.load %arg4[%c0_6, %c0_7] : memref<128x128xbf16, #tpu.memory_space<vmem>>, vector<128x128xbf16>
    %cst_8 = arith.constant dense<0.000000e+00> : vector<8x128xf32>
    %11 = tpu.matmul %9, %10, %cst_8 {dimension_numbers = #tpu.dot_dimension_numbers<[1], [0], [0], [1], [0, 0, 1, 1], [], []>} : vector<8x128xbf16>, vector<128x128xbf16>, vector<8x128xf32> -> vector<8x128xf32>
    %c0_9 = arith.constant 0 : index
    %c0_10 = arith.constant 0 : index
    %12 = vector.load %arg5[%c0_9, %c0_10] : memref<1x128xf32, #tpu.memory_space<vmem>>, vector<1x128xf32>
    %13 = vector.broadcast %12 : vector<1x128xf32> to vector<8x128xf32>
    %14 = arith.addf %11, %13 : vector<8x128xf32>
    %15 = math.tanh %14 : vector<8x128xf32>
    %16 = arith.truncf %15 : vector<8x128xf32> to vector<8x128xbf16>
    %c0_11 = arith.constant 0 : index
    %c0_12 = arith.constant 0 : index
    %17 = vector.load %arg6[%c0_11, %c0_12] : memref<8x128xbf16, #tpu.memory_space<vmem>>, vector<8x128xbf16>
    tpu.vector_store %arg6[%c0_11, %c0_12], %16 {strides = array<i32>} : memref<8x128xbf16, #tpu.memory_space<vmem>>, vector<8x128xbf16>,
    return
  }
  func.func @transform_0(%arg0: i32) -> (i32, i32) {
    %c0_i32 = arith.constant 0 : i32
    %c0_i32_0 = arith.constant 0 : i32
    return %arg0, %c0_i32 : i32, i32
  }
  func.func @transform_1(%arg0: i32) -> (i32, i32) {
    %c0_i32 = arith.constant 0 : i32
    %c0_i32_0 = arith.constant 0 : i32
    %c0_i32_1 = arith.constant 0 : i32
    return %c0_i32, %c0_i32_0 : i32, i32
  }
  func.func @transform_2(%arg0: i32) -> (i32, i32) {
    %c0_i32 = arith.constant 0 : i32
    %c0_i32_0 = arith.constant 0 : i32
    %c0_i32_1 = arith.constant 0 : i32
    return %c0_i32, %c0_i32_0 : i32, i32
  }
  func.func @transform_3(%arg0: i32) -> (i32, i32) {
    %c0_i32 = arith.constant 0 : i32
    %c0_i32_0 = arith.constant 0 : i32
    %c0_i32_1 = arith.constant 0 : i32
    return %c0_i32, %c0_i32_0 : i32, i32
  }
  func.func @transform_4(%arg0: i32) -> (i32, i32) {
    %c0_i32 = arith.constant 0 : i32
    %c0_i32_0 = arith.constant 0 : i32
    %c0_i32_1 = arith.constant 0 : i32
    return %c0_i32, %c0_i32_0 : i32, i32
  }
  func.func @transform_5(%arg0: i32) -> (i32, i32) {
    %c0_i32 = arith.constant 0 : i32
    %c0_i32_0 = arith.constant 0 : i32
    return %arg0, %c0_i32 : i32, i32
  }
}

</mosaic_0001>

<bundles_post_ra>
// kernel: _lambda_.1
= control target key start
LH: loop header
LB: loop body
LE: loop exit
PB: predicated region body
PF: predicated region fallthrough
CT: control target
= control target key end

     0   :  { %10 = vsyncpa [#allocation3], 0  ;;  %s472_s0 = inlined_call_operand.hbm [shape: f32[8,16], index: 0, kind: input, shape index: {}]   ;;  %s473_s1 = inlined_call_operand.hbm [shape: bf16[16,128], index: 1, kind: input, shape index: {}]   ;;  %s474_s2 = inlined_call_operand.hbm [shape: f32[1,128], index: 2, kind: input, shape index: {}]   ;;  %s475_s3 = inlined_call_operand.hbm [shape: bf16[128,128], index: 3, kind: input, shape index: {}]   ;;  %s476_s4 = inlined_call_operand.vmem [shape: f32[1,128], index: 4, kind: input, shape index: {}]   ;;  %s477_s5 = inlined_call_operand.vmem [shape: bf16[8,128], index: 5, kind: output, shape index: {}]  }
   0x1   :  { %11 = vsyncpa [#allocation5], 0 }
   0x2   :  { %12 = vsyncpa [#allocation8], 0  ;;  %s410_s18 = smov [#allocation4]  }
   0x3   :  { %s28_s19 = sshll.u32 %s410_s18, 4  ;;  %s29_s19 = int_to_ptr.vmem [resolvable:$true] %s28_s19 }
   0x4   :  { %s332_s20 = scalar_lea.vmem %s29_s19, 128  ;;  %p337_p1 = scmp.lt.s32.totalorder %s29_s19, %s29_s19 }
   0x5   :  { %p333_p0 = scmp.ne.s32.totalorder %s29_s19, %s332_s20  ;;  %p338_p2 = scmp.lt.s32.totalorder %s332_s20, %s332_s20 }
   0x7   :  { %p339_p3 = por %p338_p2, %p337_p1 }
   0x9   :  { %p340_p4 = pnand %p339_p3, %p333_p0 }
   0xb   :  { %343 = shalt.err (!%p340_p4)
}
   0xc   :  { %s411_s21 = smov 64   ;;  %s412_s22 = smov 4  }
   0xd   :  { %34 = dma.hbm_to_vmem [thread:$0]  %s473_s1, 128, %s29_s19, [#allocation5], %s411_s21, %s411_s21, %s412_s22  }
   0xe   :  { %s413_s25 = smov [#allocation2]   ;;  %s414_s27 = smov [#allocation6]  }
   0xf   :  { %s19_s26 = sshll.u32 %s413_s25, 4  ;;  %s41_s28 = sshll.u32 %s414_s27, 4  ;;  %s20_s26 = int_to_ptr.vmem [resolvable:$true] %s19_s26  ;;  %s42_s28 = int_to_ptr.vmem [resolvable:$true] %s41_s28 }
  0x10   :  { %s352_s29 = scalar_lea.vmem %s20_s26, 128  ;;  %p357_p6 = scmp.lt.s32.totalorder %s20_s26, %s20_s26 }
  0x11   :  { %p353_p5 = scmp.ne.s32.totalorder %s20_s26, %s352_s29  ;;  %p358_p7 = scmp.lt.s32.totalorder %s352_s29, %s352_s29 }
  0x13   :  { %p359_p8 = por %p358_p7, %p357_p6 }
  0x15   :  { %p360_p9 = pnand %p359_p8, %p353_p5 }
  0x17   :  { %363 = shalt.err (!%p360_p9)
}
  0x18   :  { %22 = dma.hbm_to_vmem [thread:$0]  %s472_s0, 128, %s20_s26, [#allocation3]  }
  0x19   :  { %s372_s7 = scalar_lea.vmem %s42_s28, 16  ;;  %s376_s1 = scalar_lea.vmem %s42_s28, 32 }
  0x1a   :  { %p373_p10 = scmp.ne.s32.totalorder %s42_s28, %s372_s7  ;;  %p377_p11 = scmp.lt.s32.totalorder %s42_s28, %s42_s28 }
  0x1b   :  { %p378_p12 = scmp.lt.s32.totalorder %s376_s1, %s372_s7 }
  0x1d   :  { %p379_p13 = por %p378_p12, %p377_p11 }
  0x1f   :  { %p380_p0 = pnand %p379_p13, %p373_p10 }
  0x21   :  { %383 = shalt.err (!%p380_p0)
}
  0x22   :  { %44 = dma.hbm_to_vmem [thread:$0]  %s474_s2, 16, %s42_s28, [#allocation5]  }
  0x23   :  { %s415_s10 = smov [#allocation7]  }
  0x24   :  { %s50_s11 = sshll.u32 %s415_s10, 4  ;;  %s51_s11 = int_to_ptr.vmem [resolvable:$true] %s50_s11 }
  0x25   :  { %s392_s12 = scalar_lea.vmem %s51_s11, 1024  ;;  %p397_p2 = scmp.lt.s32.totalorder %s51_s11, %s51_s11 }
  0x26   :  { %p393_p1 = scmp.ne.s32.totalorder %s51_s11, %s392_s12  ;;  %p398_p3 = scmp.lt.s32.totalorder %s392_s12, %s392_s12 }
  0x28   :  { %p399_p4 = por %p398_p3, %p397_p2 }
  0x2a   :  { %p400_p5 = pnand %p399_p4, %p393_p1 }
  0x2c   :  { %403 = shalt.err (!%p400_p5)
}
  0x2d   :  { %56 = dma.hbm_to_vmem [thread:$0]  %s475_s3, 1024, %s51_s11, [#allocation8], %s411_s21, %s411_s21, %s412_s22  }
  0x2e   :  { %404 = dma.done.wait [#allocation3], 128  }
  0x2f   :  { %405 = vsyncadd [#allocation3], 4294967168 }
  0x30   :  { %406 = dma.done.wait [#allocation5], 144  }
  0x31   :  { %407 = vsyncadd [#allocation5], 4294967152 }
  0x32   :  { %408 = dma.done.wait [#allocation8], 1024  }
  0x33   :  { %409 = vsyncadd [#allocation8], 4294966272  ;;  %v416_v0 = vmov 0.0   ;;  %vm417_vm0 = vmmov 0   ;;  %v313_v1 = vld [vmem:[#allocation4] sm:$0xff]   ;;  %v72_v2 = vld [vmem:[#allocation2] sm:$0xff] }
  0x34   :  { %279 = vmatprep.subr.bf16.mxu0 %v416_v0  ;;  %281 = vmatprep.mubr.msk.bf16.mxu0 %vm417_vm0, %v416_v0  ;;  %v73_v3 = vpack.c.bf16 %v72_v2, %v72_v2  ;;  %vm89_vm1 = vcmask 130048   ;;  %v314_v4 = vld [vmem:[#allocation7 + $0x38] sm:$0xff]   ;;  %v315_v5 = vld [vmem:[#allocation7 + $0x30] sm:$0xff]   ;;  %v316_v6 = vld [vmem:[#allocation7 + $0x28] sm:$0xff]  }
  0x35   :  { %285 = vmatprep.subr.bf16.mxu1 %v416_v0  ;;  %301 = vmatprep.mubr.msk.bf16.mxu1 %vm417_vm0, %v416_v0  ;;  %v317_v7 = vld [vmem:[#allocation7 + $0x20] sm:$0xff]   ;;  %v318_v8 = vld [vmem:[#allocation7 + $0x18] sm:$0xff]   ;;  %v319_v9 = vld [vmem:[#allocation7 + $0x10] sm:$0xff]  }
  0x36   :  { %280 = vmatpush3.bf16.msra.mxu0 %v313_v1  ;;  %286 = vmatpush3.bf16.msra.mxu1 %v314_v4  ;;  %v320_v10 = vld [vmem:[#allocation7 + $0x8] sm:$0xff]   ;;  %v321_v11 = vld [vmem:[#allocation7] sm:$0xff]   ;;  %v256_v12 = vld [vmem:[#allocation6] ss:$0 sm:$0xff] }
  0x37   :  { %287 = vmatprep.subr.bf16.mxu1 %v416_v0  ;;  %v259_v20 = vld [vmem:[%s476_s4] ss:$0 sm:$0xff] }
  0x39   :  { %282 = vmatmul.mubr.msk.bf16.vlgmr.msra.gmra.mxu0 %vm89_vm1, %v73_v3 }
  0x3a   :  { %288 = vmatpush3.bf16.msra.mxu1 %v315_v5 }
  0x3b   :  { %289 = vmatprep.subr.bf16.mxu1 %v416_v0 }
  0x3e   :  { %290 = vmatpush3.bf16.msra.mxu1 %v316_v6 }
  0x3f   :  { %291 = vmatprep.subr.bf16.mxu1 %v416_v0 }
  0x42   :  { %292 = vmatpush3.bf16.msra.mxu1 %v317_v7 }
  0x43   :  { %293 = vmatprep.subr.bf16.mxu1 %v416_v0 }
  0x46   :  { %294 = vmatpush3.bf16.msra.mxu1 %v318_v8 }
  0x47   :  { %295 = vmatprep.subr.bf16.mxu1 %v416_v0 }
  0x4a   :  { %296 = vmatpush3.bf16.msra.mxu1 %v319_v9 }
  0x4b   :  { %297 = vmatprep.subr.bf16.mxu1 %v416_v0 }
  0x4e   :  { %298 = vmatpush3.bf16.msra.mxu1 %v320_v10 }
  0x4f   :  { %299 = vmatprep.subr.bf16.mxu1 %v416_v0 }
  0x52   :  { %300 = vmatpush3.bf16.msra.mxu1 %v321_v11 }
  0xf9   :  { %v127_v13 = vpop.f32.mrf.mxu0 }
  0xfa   :  { %v128_v14 = vadd.f32 %v256_v12, %v127_v13 }
  0xfb   :  { %v283_v15 = vpop.f32.mrf.mxu0 }
  0xfc   :  { %v133_v16 = vmax.f32 %v128_v14, 0.0 }
  0xfd   :  { %v130_v17 = vpop.f32.mrf.mxu0 }
  0xfe   :  { %v134_v18 = vpack.c.bf16 %v133_v16, %v133_v16 }
  0xff   :  { %v284_v19 = vpop.f32.mrf.mxu0 }
 0x100   :  { %302 = vmatmul.mubr.bf16.vlgmr.msra.gmra.mxu1 %v134_v18 }
 0x1c0   :  { %v240_v21 = vpop.f32.mrf.mxu1 }
 0x1c1   :  { %v241_v22 = vadd.f32 %v259_v20, %v240_v21 }
 0x1c2   :  { %v303_v23 = vpop.f32.mrf.mxu1 }
 0x1c3   :  { %322 = vtanh.f32 %v241_v22 }
 0x1c4   :  { %v243_v24 = vpop.f32.mrf.mxu1 }
 0x1c6   :  { %v304_v25 = vpop.f32.mrf.mxu1 }
 0x1d0   :  { %v323_v26 = vpop.eup %322 }
 0x1d1   :  { %v247_v27 = vpack.c.bf16 %v323_v26, %v323_v26 }
 0x1d3   :  { %248 = vst [vmem:[%s477_s5] sm:$0xf] %v247_v27 }
 0x1d4   :  { %253 = vsyncpa [#allocation3], 1 }
 0x1d5   :  { %254 = vsyncpa [#allocation5], 1 }
 0x1d6   :  { %255 = vsyncpa [#allocation8], 1 }

</bundles_post_ra>
